<compile_context>
chip_gen: v7x
topology: tpu7x:2x2x1
jax: 0.10.0
libtpu: 0.0.40
codegen_flags: <defaults>
</compile_context>

<pallas_src>
import jax
import jax.numpy as jnp
import numpy as np
from jax.experimental import pallas as pl
from jax.experimental.pallas import tpu as pltpu

_MIB = 1024 * 1024


def _round_up(x, m):
    return ((x + m - 1) // m) * m


def _vmem_capacity_bytes():
    try:
        return int(pltpu.get_tpu_info().vmem_capacity_bytes)
    except Exception:
        return 64 * _MIB  # conservative (v7x); correct-but-slower elsewhere


_VMEM_CAPACITY = _vmem_capacity_bytes()
# Leave headroom for Mosaic internal scratch / compiler spills.
_VMEM_BUDGET = max(32 * _MIB, int(0.75 * _VMEM_CAPACITY))
# Single-buffered resident table threshold (~0.4 * physical VMEM).
_RESIDENT_TABLE_LIMIT = int(0.4 * _VMEM_CAPACITY)


def _vmem_limit(est_bytes):
    return int(min(max(int(est_bytes), 32 * _MIB), _VMEM_BUDGET))


# ----------------------------------------------------------------------------
# Host-side prep (scaling + per-column denominator/phase).
# ----------------------------------------------------------------------------
def _log_scale_np(values):
    """log_scaling_function on the host: x>1 -> log(x)+1 ; x<-1 -> -log(-x)-1."""
    v = np.asarray(values, dtype=np.float32).reshape(-1)
    out = v.copy()
    pos = v > 1.0
    neg = v < -1.0
    out[pos] = np.log(v[pos]) + np.float32(1.0)
    out[neg] = -np.log(-v[neg]) - np.float32(1.0)
    return out


def _denom_phase_np(d, d_pad, n):
    """(2, d_pad): row 0 per-column denominator, row 1 per-column phase.

    sin(x*denom + phase) reproduces the interleaved {sin, cos} row; columns
    >= d are zero-padded (denom=phase=0 -> sin(0)=0, sliced off later).
    """
    j = np.arange(d // 2, dtype=np.float64)
    denom_half = 1.0 / np.power(float(n), 2.0 * j / float(d))
    dp = np.zeros((2, d_pad), dtype=np.float32)
    dp[0, 0:d:2] = denom_half
    dp[0, 1:d:2] = denom_half
    dp[1, 1:d:2] = np.pi / 2.0  # odd (cos) columns: sin(theta + pi/2) = cos
    return dp


# ----------------------------------------------------------------------------
# Kernel 1: build sinusoidal rows for pre-scaled values (fused FMA + sin).
# ----------------------------------------------------------------------------
def _sinusoid_kernel(x_ref, dp_ref, out_ref):
    x = x_ref[...]                      # (TV, 1) pre-scaled values
    denom = dp_ref[0:1, :]              # (1, d_pad)
    phase = dp_ref[1:2, :]              # (1, d_pad)
    out_ref[...] = jnp.sin(x * denom + phase)


def _sinusoid_rows(scaled_np, d, n, block_v=512):
    """scaled_np: (V,) f32 pre-scaled values -> (V_pad, d_pad) f32 rows."""
    d = int(d)
    assert d % 2 == 0, "output_size must be even (sin/cos interleave)"
    d_pad = _round_up(d, 128)           # lane-dense columns
    v = int(scaled_np.shape[0])
    tv = min(block_v, _round_up(max(v, 1), 8))
    v_pad = _round_up(max(v, 1), tv)

    x = np.zeros((v_pad, 1), dtype=np.float32)
    x[:v, 0] = scaled_np
    dp = _denom_phase_np(d, d_pad, n)

    est = 2 * (tv * 4 + 2 * d_pad * 4 + tv * d_pad * 4)  # double-buffered tiles
    return pl.pallas_call(
        _sinusoid_kernel,
        out_shape=jax.ShapeDtypeStruct((v_pad, d_pad), jnp.float32),
        grid_spec=pltpu.PrefetchScalarGridSpec(
            num_scalar_prefetch=0,
            grid=(v_pad // tv,),
            in_specs=[pl.BlockSpec((tv, 1), lambda i: (i, 0)),
                      pl.BlockSpec((2, d_pad), lambda i: (0, 0))],
            out_specs=pl.BlockSpec((tv, d_pad), lambda i: (i, 0))),
        compiler_params=pltpu.CompilerParams(
            dimension_semantics=("parallel",),
            vmem_limit_bytes=_vmem_limit(est)),
    )(jnp.asarray(x), jnp.asarray(dp))


def build_sinusoidal_table(all_values, output_size, n=10000, block_v=512):
    """-> (V_pad, d_pad) f32 table; rows >= V and cols >= d are padding."""
    scaled = _log_scale_np(all_values)
    return _sinusoid_rows(scaled, output_size, n, block_v=block_v)


# ----------------------------------------------------------------------------
# Kernel 2a: resident-table row gather (ids in SMEM, table whole in VMEM).
# ----------------------------------------------------------------------------
def _resident_gather_kernel(ids_ref, table_ref, out_ref):
    """out[q, :] = table[ids[base + q], :] ; exact copy, no matmul."""
    tq = out_ref.shape[0]
    base = pl.program_id(0) * tq

    def body(q, carry):
        row = ids_ref[base + q]
        out_ref[pl.ds(q, 1), :] = table_ref[pl.ds(row, 1), :]
        return carry

    jax.lax.fori_loop(0, tq, body, 0)


# ----------------------------------------------------------------------------
# Kernel 2b: large-table fallback — batched HBM row-gather DMAs per grid step.
# ----------------------------------------------------------------------------
def _hbm_gather_kernel(ids_ref, table_hbm, out_ref, stage_ref, sem):
    """K manual row DMAs from the HBM table into a VMEM staging block."""
    k = out_ref.shape[0]
    base = pl.program_id(0) * k

    def start(q, carry):
        row = ids_ref[base + q]
        pltpu.make_async_copy(table_hbm.at[pl.ds(row, 1), :],
                              stage_ref.at[pl.ds(q, 1), :], sem).start()
        return carry

    jax.lax.fori_loop(0, k, start, 0)

    def wait(q, carry):
        # Same-shape descriptor; all copies share one DMA semaphore.
        pltpu.make_async_copy(table_hbm.at[pl.ds(0, 1), :],
                              stage_ref.at[pl.ds(q, 1), :], sem).wait()
        return carry

    jax.lax.fori_loop(0, k, wait, 0)
    out_ref[...] = stage_ref[...]
    # TODO(synk): overlap the row DMAs across grid steps with a second staging
    # buffer (double-buffered prefetch of the next id block).


def embedding_lookup(table_pad, ids_i32, output_size, block_q=1024,
                     fallback_block_q=128, force_hbm_gather=False):
    """table_pad: (V_pad, d_pad) f32, ids_i32: (Nq,) int32 -> (Nq, d) f32."""
    v_pad, d_pad = table_pad.shape
    d = int(output_size)
    nq = int(ids_i32.shape[0])
    table_bytes = int(v_pad) * int(d_pad) * 4

    resident = (table_bytes <= _RESIDENT_TABLE_LIMIT) and (not force_hbm_gather)
    tq = min(block_q if resident else fallback_block_q, _round_up(nq, 8))
    nq_pad = _round_up(nq, tq)
    ids = jnp.zeros((nq_pad,), dtype=jnp.int32).at[:nq].set(
        ids_i32.astype(jnp.int32))

    if resident:
        # Single-buffered whole-array table in VMEM + double-buffered output.
        est = table_bytes + 2 * tq * d_pad * 4 + 2 * _MIB
        out = pl.pallas_call(
            _resident_gather_kernel,
            out_shape=jax.ShapeDtypeStruct((nq_pad, d_pad), jnp.float32),
            grid_spec=pltpu.PrefetchScalarGridSpec(
                num_scalar_prefetch=1,
                grid=(nq_pad // tq,),
                in_specs=[pl.BlockSpec(memory_space=pltpu.MemorySpace.VMEM)],
                out_specs=pl.BlockSpec((tq, d_pad), lambda i, ids_s: (i, 0))),
            compiler_params=pltpu.CompilerParams(
                dimension_semantics=("parallel",),
                vmem_limit_bytes=_vmem_limit(est)),
        )(ids, table_pad)
    else:
        # Huge tables: keep the table in HBM and gather K rows per step via
        # manual DMAs (amortizes per-step overhead, many DMAs in flight).
        est = 3 * tq * d_pad * 4 + 2 * _MIB
        out = pl.pallas_call(
            _hbm_gather_kernel,
            out_shape=jax.ShapeDtypeStruct((nq_pad, d_pad), jnp.float32),
            grid_spec=pltpu.PrefetchScalarGridSpec(
                num_scalar_prefetch=1,
                grid=(nq_pad // tq,),
                in_specs=[pl.BlockSpec(memory_space=pl.ANY)],
                out_specs=pl.BlockSpec((tq, d_pad), lambda i, ids_s: (i, 0)),
                scratch_shapes=[pltpu.VMEM((tq, d_pad), jnp.float32),
                                pltpu.SemaphoreType.DMA(())]),
            compiler_params=pltpu.CompilerParams(
                dimension_semantics=("arbitrary",),
                vmem_limit_bytes=_vmem_limit(est)),
        )(ids, table_pad)

    return out[:nq, :d]


# ----------------------------------------------------------------------------
# PositionalEncoder wrapper (value->id vocab stays host-side, like PyTorch).
# ----------------------------------------------------------------------------
class PositionalEncoderPallas:
    # TODO(synk): only the 'log' scaler is ported; the 'quantile' scaler
    # (data-dependent sort/searchsorted over train_values) is not.
    def __init__(self, output_size, train_values, all_values, n=10000,
                 scaler="log"):
        assert scaler == "log", "only the 'log' scaler is implemented"
        assert output_size % 2 == 0
        self.output_size = int(output_size)
        self.n = n
        self.all_values = list(all_values)
        self.train_values = list(train_values)
        self.value_vocab = {v: i for i, v in enumerate(self.all_values)}
        self.num_values = len(self.all_values)
        # (V_pad, d_pad); rows >= V / cols >= d are padding, never selected.
        self.table_padded = build_sinusoidal_table(
            self.all_values, self.output_size, n=n)
        self.table = self.table_padded[:self.num_values, :self.output_size]

    def values2ids(self, values):
        return [self.value_vocab[v] for v in values]

    def value2id(self, value):
        return self.value_vocab[value]

    def get_embeddings(self):
        return self.forward(self.all_values)

    def forward(self, x, use_direct=None):
        if not isinstance(x, list):
            x = [x]
        # Same semantics as the module: unknown values raise KeyError.
        ids = self.values2ids(x)
        if use_direct is None:
            use_direct = len(x) <= self.num_values
        if use_direct:
            # Compute sin(scale(x)*denom + phase) directly on the queried
            # values (identical arithmetic to the table rows, no HBM round
            # trip and no second gather kernel).
            scaled = _log_scale_np(x)
            rows = _sinusoid_rows(scaled, self.output_size, self.n)
            return rows[:len(x), :self.output_size]
        return embedding_lookup(self.table_padded,
                                jnp.asarray(ids, dtype=jnp.int32),
                                self.output_size)


# ----------------------------------------------------------------------------
# Pure-numpy reference (PyTorch-equivalent) for the correctness check.
# ----------------------------------------------------------------------------
def _reference_table(all_values, d, n):
    x = np.asarray(all_values, dtype=np.float32).copy()
    pos = x > 1
    neg = x < -1
    x[pos] = np.log(x[pos]) + 1
    x[neg] = -np.log(-x[neg]) - 1
    j = np.arange(0, d // 2, dtype=np.float32)
    denom = 1.0 / np.power(float(n), 2.0 * j / d)
    ang = x[:, None] * denom[None, :]
    w = np.zeros((len(all_values), d), dtype=np.float32)
    w[:, 0::2] = np.sin(ang)
    w[:, 1::2] = np.cos(ang)
    return w


if __name__ == "__main__":
    key = jax.random.PRNGKey(0)
    output_size = 32          # d (even)
    num_values = 16           # vocabulary of numerals

    raw = jax.random.uniform(key, (num_values,), minval=-50.0, maxval=50.0)
    all_values = [float(v) for v in np.asarray(raw)]
    train_values = all_values

    enc = PositionalEncoderPallas(output_size, train_values, all_values,
                                  n=10000, scaler="log")

    ref_table = _reference_table(all_values, output_size, 10000)

    # 1) table-build kernel
    table = jax.block_until_ready(enc.table)
    np.testing.assert_allclose(np.asarray(table), ref_table,
                               rtol=1e-5, atol=2e-5)

    # 2) forward on a batch of 8 queries (direct fused scale+sin path)
    queries = all_values[::2]
    out = jax.block_until_ready(enc.forward(queries))
    ref_ids = [all_values.index(q) for q in queries]
    ref_out = ref_table[np.asarray(ref_ids)]
    np.testing.assert_allclose(np.asarray(out), ref_out, rtol=1e-5, atol=2e-5)
    assert out.shape == (len(queries), output_size)

    # 3) VMEM-resident row-gather lookup path
    ids = jnp.asarray(enc.values2ids(queries), dtype=jnp.int32)
    out_lut = jax.block_until_ready(
        embedding_lookup(enc.table_padded, ids, output_size))
    np.testing.assert_allclose(np.asarray(out_lut), ref_out,
                               rtol=1e-5, atol=2e-5)

    # 4) large-table fallback (batched HBM row-gather DMAs), forced on the
    #    small table so the path is exercised too.
    out_hbm = jax.block_until_ready(
        embedding_lookup(enc.table_padded, ids, output_size,
                         force_hbm_gather=True))
    np.testing.assert_allclose(np.asarray(out_hbm), ref_out,
                               rtol=1e-5, atol=2e-5)

    print("KERNEL_OK")
</pallas_src>

<mosaic_0001>
module attributes {stable_mosaic.version = 11 : i64} {
  func.func @_sinusoid_kernel(%arg0: i32, %arg1: memref<16x1xf32, #tpu.memory_space<vmem>>, %arg2: memref<2x128xf32, #tpu.memory_space<vmem>>, %arg3: memref<16x128xf32, #tpu.memory_space<vmem>>) attributes {dimension_semantics = [#tpu.dimension_semantics<parallel>], iteration_bounds = array<i64: 1>, scalar_prefetch = 0 : i64, scratch_operands = 0 : i64, tpu.core_type = #tpu.core_type<tc>, window_params = [{transform_indices = @transform_0, window_bounds = array<i64: 16, 1>}, {pipeline_mode = #tpu.pipeline_mode<synchronous>, transform_indices = @transform_1, window_bounds = array<i64: 2, 128>}, {transform_indices = @transform_2, window_bounds = array<i64: 16, 128>}]} {
    %c0 = arith.constant 0 : index
    %c0_0 = arith.constant 0 : index
    %0 = vector.load %arg1[%c0, %c0_0] : memref<16x1xf32, #tpu.memory_space<vmem>>, vector<16x1xf32>
    %c0_1 = arith.constant 0 : index
    %c0_2 = arith.constant 0 : index
    %1 = vector.load %arg2[%c0_1, %c0_2] : memref<2x128xf32, #tpu.memory_space<vmem>>, vector<1x128xf32>
    %c1 = arith.constant 1 : index
    %c0_3 = arith.constant 0 : index
    %2 = vector.load %arg2[%c1, %c0_3] : memref<2x128xf32, #tpu.memory_space<vmem>>, vector<1x128xf32>
    %3 = vector.broadcast %0 : vector<16x1xf32> to vector<16x128xf32>
    %4 = vector.broadcast %1 : vector<1x128xf32> to vector<16x128xf32>
    %5 = arith.mulf %3, %4 : vector<16x128xf32>
    %6 = vector.broadcast %2 : vector<1x128xf32> to vector<16x128xf32>
    %7 = arith.addf %5, %6 : vector<16x128xf32>
    %8 = math.sin %7 : vector<16x128xf32>
    %c0_4 = arith.constant 0 : index
    %c0_5 = arith.constant 0 : index
    %9 = vector.load %arg3[%c0_4, %c0_5] : memref<16x128xf32, #tpu.memory_space<vmem>>, vector<16x128xf32>
    tpu.vector_store %arg3[%c0_4, %c0_5], %8 {strides = array<i32>} : memref<16x128xf32, #tpu.memory_space<vmem>>, vector<16x128xf32>,
    return
  }
  func.func @transform_0(%arg0: i32) -> (i32, i32) {
    %c0_i32 = arith.constant 0 : i32
    %c0_i32_0 = arith.constant 0 : i32
    return %arg0, %c0_i32 : i32, i32
  }
  func.func @transform_1(%arg0: i32) -> (i32, i32) {
    %c0_i32 = arith.constant 0 : i32
    %c0_i32_0 = arith.constant 0 : i32
    %c0_i32_1 = arith.constant 0 : i32
    return %c0_i32, %c0_i32_0 : i32, i32
  }
  func.func @transform_2(%arg0: i32) -> (i32, i32) {
    %c0_i32 = arith.constant 0 : i32
    %c0_i32_0 = arith.constant 0 : i32
    return %arg0, %c0_i32 : i32, i32
  }
}

</mosaic_0001>

<bundles_post_ra>
// kernel: tpu_custom_call.1
= control target key start
LH: loop header
LB: loop body
LE: loop exit
PB: predicated region body
PF: predicated region fallthrough
CT: control target
= control target key end

     0   :  { %v325_v1 = vmov 0   ;;  %s442_s0 = inlined_call_operand.vmem [shape: f32[16,1], index: 0, kind: input, shape index: {}]   ;;  %s443_s1 = inlined_call_operand.vmem [shape: f32[2,128], index: 1, kind: input, shape index: {}]   ;;  %s444_s2 = inlined_call_operand.hbm [shape: f32[16,128], index: 2, kind: output, shape index: {}]  }
   0x1   :  { %v12_v0 = vld [vmem:[%s442_s0] sm:$0xff]  ;;  %292 = vset.pattern.permute.xlu0 %v325_v1  ;;  %v13_v2 = vld [vmem:[%s442_s0 + $0x8] sm:$0xff] }
   0x2   :  { %18 = vperm.xlu0 %292, %v12_v0  }
   0x3   :  { %7 = vsyncpa [#allocation3], 0  ;;  %v264_v3 = vld [vmem:[%s443_s1] ss:$0 sm:$0xff]  ;;  %v265_v4 = vld [vmem:[%s443_s1 + $0x1] ss:$0 sm:$0xff] }
   0x4   :  { %v326_v27 = vmov 683565275   ;;  %v327_v31 = vmov 2475754826   ;;  %v328_v33 = vmov 2131351028  }
   0x5   :  { %v329_v35 = vmov 2102212464   ;;  %v330_v37 = vmov 920167782   ;;  %v331_v44 = vmov 1326507024  }
   0x6   :  { %23 = vperm.xlu0 %292, %v13_v2   ;;  %s332_s0 = smov [#allocation2]  }
   0x7   :  { %s253_s1 = sshll.u32 %s332_s0, 4  ;;  %s254_s1 = int_to_ptr.vmem [resolvable:$true] %s253_s1 }
   0x8   :  { %s301_s17 = scalar_lea.vmem %s254_s1, 256  ;;  %p306_p1 = scmp.lt.s32.totalorder %s254_s1, %s254_s1 }
   0x9   :  { %p302_p0 = scmp.ne.s32.totalorder %s254_s1, %s301_s17  ;;  %p307_p2 = scmp.lt.s32.totalorder %s301_s17, %s301_s17 }
   0xb   :  { %p308_p3 = por %p307_p2, %p306_p1 }
   0xd   :  { %p309_p4 = pnand %p308_p3, %p302_p0 }
  0x81   :  { %v19_v5 = vpop.permute.xlu0 %18 }
  0x82   :  { %v30_v6 = vmul.f32 %v264_v3, %v19_v5 }
  0x84   :  { %v362_v7 = vadd.f32 %v265_v4, %v30_v6 }
  0x85   :  { %v24_v8 = vpop.permute.xlu0 %23 }
  0x86   :  { %v38_v9 = vand.u32 2147483647, %v362_v7  ;;  %v41_v10 = vand.u32 2139095040, %v362_v7  ;;  %v31_v11 = vmul.f32 %v264_v3, %v24_v8  ;;  %vm40_vm14 = vcmp.lt.s32.totalorder %v362_v7, 0 }
  0x88   :  { %v42_v12 = vshrl.u32 %v41_v10, 23  ;;  %v366_v13 = vadd.f32 %v265_v4, %v31_v11  ;;  %v45_v14 = vand.u32 8388607, %v38_v9  ;;  %vm39_vm15 = vcmp.le.f32.partialorder %v38_v9, 0.7853982 }
  0x8a   :  { %v266_v15 = vadd.s32 4294967169, %v42_v12  ;;  %v145_v16 = vand.u32 2139095040, %v366_v13  ;;  %v46_v18 = vor.u32 8388608, %v45_v14  ;;  %v142_v20 = vand.u32 2147483647, %v366_v13 }
  0x8c   :  { %v48_v17 = vadd.s32 1, %v266_v15  ;;  %v146_v19 = vshrl.u32 %v145_v16, 23  ;;  %v372_v25 = vshll.u32 %v46_v18, 8  ;;  %v149_v29 = vand.u32 8388607, %v142_v20 }
  0x8e   :  { %vm49_vm0 = vcmp.gt.s32.totalorder %v48_v17, 0  ;;  %v270_v22 = vadd.s32 4294967169, %v146_v19  ;;  %v150_v59 = vor.u32 8388608, %v149_v29 }
  0x8f   :  { %v50_v21 = vsel %vm49_vm0, %v48_v17, 0  ;;  %vm144_vm0 = vcmp.lt.s32.totalorder %v366_v13, 0 }
  0x90   :  { %v51_v23 = vshrl.u32 %v50_v21, 5  ;;  %v52_v24 = vand.u32 31, %v50_v21  ;;  %v152_v30 = vadd.s32 1, %v270_v22  ;;  %v190_v10 = vshll.u32 %v150_v59, 8 }
  0x92   :  { %v53_v26 = vsub.s32 32, %v52_v24  ;;  %v55_v28 = vshll.u32 %v326_v27, %v52_v24  ;;  %v58_v32 = vshll.u32 %v327_v31, %v52_v24  ;;  %v61_v34 = vshll.u32 %v328_v33, %v52_v24 }
  0x93   :  { %v64_v36 = vshll.u32 %v329_v35, %v52_v24  ;;  %v67_v38 = vshll.u32 %v330_v37, %v52_v24  ;;  %vm70_vm1 = vcmp.lt.s32.totalorder %v51_v23, 1  ;;  %vm72_vm2 = vcmp.lt.s32.totalorder %v51_v23, 3 }
  0x94   :  { %v56_v39 = vshrl.u32 %v327_v31, %v53_v26  ;;  %v59_v40 = vshrl.u32 %v328_v33, %v53_v26  ;;  %v62_v41 = vshrl.u32 %v329_v35, %v53_v26  ;;  %v54_v42 = vshrl.u32 %v326_v27, %v53_v26 }
  0x95   :  { %v65_v43 = vshrl.u32 %v330_v37, %v53_v26  ;;  %v68_v45 = vshrl.u32 %v331_v44, %v53_v26  ;;  %vm153_vm3 = vcmp.gt.s32.totalorder %v152_v30, 0  ;;  %vm73_vm4 = vcmp.lt.s32.totalorder %v51_v23, 4 }
  0x96   :  { %v57_v46 = vor.u32 %v56_v39, %v55_v28  ;;  %v60_v47 = vor.u32 %v59_v40, %v58_v32  ;;  %v63_v48 = vor.u32 %v62_v41, %v61_v34  ;;  %v154_v51 = vsel %vm153_vm3, %v152_v30, 0 }
  0x97   :  { %v66_v49 = vor.u32 %v65_v43, %v64_v36  ;;  %v69_v50 = vor.u32 %v68_v45, %v67_v38  ;;  %vm71_vm5 = vcmp.lt.s32.totalorder %v51_v23, 2  ;;  %v156_v62 = vand.u32 31, %v154_v51 }
  0x98   :  { %v74_v52 = vsel %vm70_vm1, %v54_v42, %v57_v46  ;;  %v75_v53 = vsel %vm73_vm4, %v63_v48, 2102212464  ;;  %v78_v54 = vsel %vm70_vm1, %v57_v46, %v60_v47  ;;  %v82_v55 = vsel %vm70_vm1, %v60_v47, %v63_v48 }
  0x99   :  { %v76_v56 = vsel %vm72_vm2, %v60_v47, %v75_v53  ;;  %v79_v57 = vsel %vm73_vm4, %v66_v49, 920167782  ;;  %v83_v58 = vsel %vm73_vm4, %v69_v50, 1326507024  ;;  %v155_v6 = vshrl.u32 %v154_v51, 5 }
  0x9a   :  { %v80_v60 = vsel %vm72_vm2, %v63_v48, %v79_v57  ;;  %v84_v61 = vsel %vm72_vm2, %v66_v49, %v83_v58  ;;  %v77_v63 = vsel %vm71_vm5, %v74_v52, %v76_v56  ;;  %v157_v8 = vsub.s32 32, %v156_v62 }
  0x9b   :  { %v81_v0 = vsel %vm71_vm5, %v78_v54, %v80_v60  ;;  %v85_v1 = vsel %vm71_vm5, %v82_v55, %v84_v61  ;;  %v93_v11 = vmul.u32 %v372_v25, %v77_v63  ;;  %v159_v12 = vshll.u32 %v326_v27, %v156_v62 }
  0x9c   :  { %v385_v2 = vmul.u32.u64.low %v372_v25, %v85_v1  ;;  %v386_v3 = vmul.u32.u64.high %v372_v25, %v85_v1, %v385_v2  ;;  %v389_v4 = vmul.u32.u64.low %v372_v25, %v81_v0  ;;  %v390_v5 = vmul.u32.u64.high %v372_v25, %v81_v0, %v389_v4 }
  0x9d   :  { %v162_v14 = vshll.u32 %v327_v31, %v156_v62  ;;  %v165_v15 = vshll.u32 %v328_v33, %v156_v62  ;;  %v160_v16 = vshrl.u32 %v327_v31, %v157_v8  ;;  %v163_v17 = vshrl.u32 %v328_v33, %v157_v8 }
  0x9e   :  { %v166_v18 = vshrl.u32 %v329_v35, %v157_v8  ;;  %v168_v19 = vshll.u32 %v329_v35, %v156_v62  ;;  %vm95_vm6 = vc.u32 %v386_v3, %v389_v4  ;;  %v96_v21 = vadd.s32 1, %v390_v5 }
  0x9f   :  { %v169_v22 = vshrl.u32 %v330_v37, %v157_v8  ;;  %v171_v23 = vshll.u32 %v330_v37, %v156_v62  ;;  %v161_v24 = vor.u32 %v160_v16, %v159_v12  ;;  %v164_v26 = vor.u32 %v163_v17, %v162_v14 }
  0xa0   :  { %v167_v28 = vor.u32 %v166_v18, %v165_v15  ;;  %v172_v29 = vshrl.u32 %v331_v44, %v157_v8  ;;  %v97_v25 = vsel %vm95_vm6, %v96_v21, %v390_v5  ;;  %vm174_vm7 = vcmp.lt.s32.totalorder %v155_v6, 1 }
  0xa1   :  { %v170_v30 = vor.u32 %v169_v22, %v168_v19  ;;  %vm177_vm8 = vcmp.lt.s32.totalorder %v155_v6, 4  ;;  %v98_v31 = vadd.s32 %v97_v25, %v93_v11  ;;  %vm176_vm9 = vcmp.lt.s32.totalorder %v155_v6, 3 }
  0xa2   :  { %v173_v32 = vor.u32 %v172_v29, %v171_v23  ;;  %v179_v33 = vsel %vm177_vm8, %v167_v28, 2102212464  ;;  %v158_v34 = vshrl.u32 %v326_v27, %v157_v8  ;;  %v182_v35 = vsel %vm174_vm7, %v161_v24, %v164_v26 }
  0xa3   :  { %v183_v36 = vsel %vm177_vm8, %v170_v30, 920167782  ;;  %v186_v38 = vsel %vm174_vm7, %v164_v26, %v167_v28  ;;  %v99_v39 = vadd.s32 536870912, %v98_v31  ;;  %vm175_vm10 = vcmp.lt.s32.totalorder %v155_v6, 2 }
  0xa4   :  { %v184_v37 = vsel %vm176_vm9, %v167_v28, %v183_v36  ;;  %v187_v40 = vsel %vm177_vm8, %v173_v32, 1326507024  ;;  %v178_v41 = vsel %vm174_vm7, %v158_v34, %v161_v24  ;;  %v180_v42 = vsel %vm176_vm9, %v164_v26, %v179_v33 }
  0xa5   :  { %v185_v43 = vsel %vm175_vm10, %v182_v35, %v184_v37  ;;  %v188_v44 = vsel %vm176_vm9, %v170_v30, %v187_v40  ;;  %v100_v45 = vshrl.u32 %v99_v39, 30  ;;  %v181_v51 = vsel %vm175_vm10, %v178_v41, %v180_v42 }
  0xa6   :  { %v189_v46 = vsel %vm175_vm10, %v186_v38, %v188_v44  ;;  %v400_v47 = vmul.u32.u64.low %v190_v10, %v185_v43  ;;  %v401_v48 = vmul.u32.u64.high %v190_v10, %v185_v43, %v400_v47  ;;  %v197_v54 = vmul.u32 %v190_v10, %v181_v51 }
  0xa7   :  { %v403_v49 = vmul.u32.u64.low %v190_v10, %v189_v46  ;;  %v404_v50 = vmul.u32.u64.high %v190_v10, %v189_v46, %v403_v49  ;;  %v101_v27 = vshll.u32 %v100_v45, 30  ;;  %v94_v2 = vadd.s32 %v389_v4, %v386_v3 }
  0xa8   :  { %v200_v53 = vadd.s32 1, %v401_v48  ;;  %v124_v24 = vsub.s32 4, %v100_v45  ;;  %vm419_vm1 = vcmp.le.f32.partialorder %v142_v20, 0.7853982  ;;  %vm130_vm5 = vweird.f32 %v362_v7 }
  0xa9   :  { %v102_v52 = vsub.s32 %v98_v31, %v101_v27  ;;  %vm199_vm11 = vc.u32 %v404_v50, %v400_v47  ;;  %v198_v3 = vadd.s32 %v400_v47, %v404_v50  ;;  %vm234_vm9 = vweird.f32 %v366_v13 }
  0xaa   :  { %v201_v56 = vsel %vm199_vm11, %v200_v53, %v401_v48  ;;  %v125_v33 = vsel %vm40_vm14, %v124_v24, %v100_v45 }
  0xab   :  { %v104_v55 = vsub.s32 0, %v102_v52  ;;  %v202_v57 = vadd.s32 %v201_v56, %v197_v54  ;;  %v127_v39 = vsel %vm39_vm15, 0, %v125_v33 }
  0xac   :  { %v131_v41 = vadd.s32 3, %v127_v39 }
  0xad   :  { %v267_v58 = vmin.u32 %v104_v55, %v102_v52  ;;  %v203_v59 = vadd.s32 536870912, %v202_v57 }
  0xae   :  { %v132_v46 = vand.u32 3, %v131_v41 }
  0xaf   :  { %v106_v60 = vclz %v267_v58  ;;  %v204_v61 = vshrl.u32 %v203_v59, 30 }
  0xb0   :  { %vm137_vm2 = vcmp.eq.s32.totalorder %v132_v46, 2  ;;  %vm134_vm3 = vcmp.eq.s32.totalorder %v132_v46, 0  ;;  %vm133_vm4 = vcmp.lt.s32.totalorder %v132_v46, 2 }
  0xb1   :  { %v268_v62 = vadd.s32 4294967294, %v106_v60  ;;  %v205_v63 = vshll.u32 %v204_v61, 30  ;;  %v228_v43 = vsub.s32 4, %v204_v61 }
  0xb3   :  { %vm269_vm12 = vcmp.lt.s32.totalorder %v268_v62, 0  ;;  %v206_v1 = vsub.s32 %v202_v57, %v205_v63  ;;  %v229_v47 = vsel %vm144_vm0, %v228_v43, %v204_v61 }
  0xb4   :  { %v109_v0 = vsel %vm269_vm12, 0, %v268_v62 }
  0xb5   :  { %v110_v5 = vsub.s32 32, %v109_v0  ;;  %v114_v6 = vsub.s32 4294967266, %v109_v0  ;;  %v208_v8 = vsub.s32 0, %v206_v1  ;;  %v111_v10 = vshll.u32 %v102_v52, %v109_v0 }
  0xb6   :  { %v231_v52 = vsel %vm419_vm1, 0, %v229_v47 }
  0xb7   :  { %v112_v11 = vshrl.u32 %v94_v2, %v110_v5  ;;  %v115_v12 = vadd.s32 127, %v114_v6  ;;  %v271_v14 = vmin.u32 %v208_v8, %v206_v1  ;;  %v235_v55 = vadd.s32 3, %v231_v52 }
  0xb9   :  { %v113_v15 = vor.u32 %v112_v11, %v111_v10  ;;  %v116_v16 = vshll.u32 %v115_v12, 23  ;;  %v210_v17 = vclz %v271_v14  ;;  %v236_v57 = vand.u32 3, %v235_v55 }
  0xbb   :  { %v117_v18 = vor.u32 4788187, %v116_v16  ;;  %v272_v19 = vadd.s32 4294967294, %v210_v17  ;;  %v120_v22 = vcvt.s32.f32 %v113_v15  ;;  %vm241_vm6 = vcmp.eq.s32.totalorder %v236_v57, 2 }
  0xbc   :  { %vm238_vm7 = vcmp.eq.s32.totalorder %v236_v57, 0  ;;  %vm237_vm8 = vcmp.lt.s32.totalorder %v236_v57, 2 }
  0xbd   :  { %v118_v21 = vand.u32 2147483647, %v117_v18  ;;  %vm273_vm13 = vcmp.lt.s32.totalorder %v272_v19, 0 }
  0xbe   :  { %v213_v26 = vsel %vm273_vm13, 0, %v272_v19 }
  0xbf   :  { %v121_v23 = vmul.f32 %v120_v22, %v118_v21  ;;  %v214_v4 = vsub.s32 32, %v213_v26  ;;  %v218_v28 = vsub.s32 4294967266, %v213_v26  ;;  %v215_v25 = vshll.u32 %v206_v1, %v213_v26 }
  0xc1   :  { %v122_v29 = vxor.u32 2147483648, %v121_v23  ;;  %v216_v30 = vshrl.u32 %v198_v3, %v214_v4  ;;  %v219_v31 = vadd.s32 127, %v218_v28 }
  0xc3   :  { %v123_v32 = vsel %vm40_vm14, %v122_v29, %v121_v23  ;;  %v217_v35 = vor.u32 %v216_v30, %v215_v25  ;;  %v220_v36 = vshll.u32 %v219_v31, 23 }
  0xc4   :  { %v126_v34 = vsel %vm39_vm15, %v362_v7, %v123_v32 }
  0xc5   :  { %293 = vcosq.f32 %v126_v34  ;;  %v221_v38 = vor.u32 4788187, %v220_v36  ;;  %v224_v40 = vcvt.s32.f32 %v217_v35 }
  0xc6   :  { %295 = vsinq.f32 %v126_v34 }
  0xc7   :  { %v222_v37 = vand.u32 2147483647, %v221_v38 }
  0xc9   :  { %v225_v42 = vmul.f32 %v224_v40, %v222_v37 }
  0xcb   :  { %v226_v44 = vxor.u32 2147483648, %v225_v42 }
  0xcd   :  { %v227_v45 = vsel %vm144_vm0, %v226_v44, %v225_v42 }
  0xce   :  { %v230_v49 = vsel %vm419_vm1, %v366_v13, %v227_v45 }
  0xcf   :  { %v294_v48 = vpop.eup %293  ;;  %297 = vcosq.f32 %v230_v49 }
  0xd0   :  { %v296_v50 = vpop.eup %295  ;;  %v138_v27 = vxor.u32 2147483648, %v294_v48  ;;  %299 = vsinq.f32 %v230_v49 }
  0xd1   :  { %v135_v51 = vxor.u32 2147483648, %v296_v50 }
  0xd2   :  { %v139_v20 = vsel %vm137_vm2, %v138_v27, %v296_v50 }
  0xd3   :  { %v136_v53 = vsel %vm134_vm3, %v294_v48, %v135_v51 }
  0xd4   :  { %v140_v54 = vsel %vm133_vm4, %v136_v53, %v139_v20 }
  0xd5   :  { %v141_v56 = vsel %vm130_vm5, nan, %v140_v54 }
  0xd6   :  { %246 = vst [vmem:[#allocation2] sm:$0xff] %v141_v56 }
  0xd9   :  { %v298_v58 = vpop.eup %297 }
  0xda   :  { %v300_v59 = vpop.eup %299  ;;  %v242_v60 = vxor.u32 2147483648, %v298_v58 }
  0xdb   :  { %v239_v61 = vxor.u32 2147483648, %v300_v59 }
  0xdc   :  { %v243_v62 = vsel %vm241_vm6, %v242_v60, %v300_v59 }
  0xdd   :  { %v240_v63 = vsel %vm238_vm7, %v298_v58, %v239_v61 }
  0xde   :  { %v244_v0 = vsel %vm237_vm8, %v240_v63, %v243_v62 }
  0xdf   :  { %v245_v7 = vsel %vm234_vm9, nan, %v244_v0 }
  0xe0   :  { %247 = vst [vmem:[#allocation2 + $0x8] sm:$0xff] %v245_v7 }
  0xe1   :  { %312 = shalt.err (!%p309_p4)
}
  0xe2   :  { %s313_s20 = scalar_lea.hbm %s444_s2, 256 }
  0xe3   :  { %p314_p5 = scmp.ne.s32.totalorder %s444_s2, %s313_s20  ;;  %p317_p6 = scmp.lt.u32.totalorder %s313_s20, %s444_s2 }
  0xe5   :  { %p319_p7 = pnand %p317_p6, %p314_p5 }
  0xe7   :  { %322 = shalt.err (!%p319_p7)
}
  0xe8   :  { %s333_s25 = smov 128   ;;  %s334_s26 = smov 8  }
  0xe9   :  { %259 = dma.vmem_to_hbm [thread:$0]  %s254_s1, 256, %s444_s2, [#allocation3], %s333_s25, %s333_s25, %s334_s26  }
  0xea   :  { %323 = dma.done.wait [#allocation3], 256  }
  0xeb   :  { %324 = vsyncadd [#allocation3], 4294967040 }
  0xec   :  { %263 = vsyncpa [#allocation3], 1 }

</bundles_post_ra>
